<compile_context>
chip_gen: v5e
topology: v5e:2x2
jax: 0.10.0
libtpu: 0.0.40
codegen_flags: <defaults>
</compile_context>

<pallas_src>
import functools

import jax
import jax.numpy as jnp
from jax.experimental import pallas as pl
from jax.experimental.pallas import tpu as pltpu

IN_FEATURES = 5        # 4 local-context features + 1 steps_number
F_PAD = 8              # feature dim (+1 ones-row for folded b1) padded to 8
HIDDEN = 32
NUM_ACTIONS = 4
A_PAD = 8              # output rows padded to a full sublane group
LANE = 128
MAX_TB = 32768         # max batch-tile width (lanes); multiple of 128
MIN_SPLIT_B = 8192     # above this batch, force >= 2 tiles (v7x megacore)


def _round_up(n, m):
    return ((n + m - 1) // m) * m


def _mlp_kernel(x_ref, w1_ref, w2_ref, b2_ref, o_ref):
    # Transposed layout: batch on the lane (last) dimension.
    # b1 is folded into w1's extra column (x has a matching ones-row).
    x = x_ref[...]                                                       # (F_PAD, TB)
    h = jnp.maximum(
        jnp.dot(w1_ref[...], x, preferred_element_type=jnp.float32), 0.0)  # (H, TB)
    o = jnp.dot(w2_ref[...], h, preferred_element_type=jnp.float32)     # (A_PAD, TB)
    o_ref[...] = (o + b2_ref[...]).astype(o_ref.dtype)


@functools.partial(jax.jit, static_argnames=("max_tb",))
def maze_forward(x, w1, b1, w2, b2, *, max_tb=MAX_TB):
    """x: (B, 1, IN_FEATURES) float32 -> logits (B, NUM_ACTIONS) float32.

    Weights use PyTorch Linear layout: w1 (HIDDEN, IN_FEATURES), b1 (HIDDEN,),
    w2 (NUM_ACTIONS, HIDDEN), b2 (NUM_ACTIONS,).
    """
    assert x.ndim == 3 and x.shape[1] == 1 and x.shape[2] == IN_FEATURES, x.shape
    B = x.shape[0]

    # Adaptive tiling: bound padding waste to <= 128 * num_tiles samples and
    # keep >= 2 tiles for large batches so both v7x TensorCores get work.
    num_tiles = pl.cdiv(B, max_tb)
    if B > MIN_SPLIT_B:
        num_tiles = max(num_tiles, 2)
    tb = _round_up(pl.cdiv(B, num_tiles), LANE)
    b_pad = num_tiles * tb

    # Layout plumbing in plain JAX (fused under this jit): flatten, append the
    # ones-row used by the folded b1, zero-pad batch & features, transpose so
    # batch sits on the lane (last) dimension.
    x2d = x.reshape(B, IN_FEATURES).astype(jnp.float32)
    ones = jnp.ones((B, 1), jnp.float32)
    x_aug = jnp.concatenate([x2d, ones], axis=1)                          # (B, 6)
    x_t = jnp.pad(
        x_aug, ((0, b_pad - B), (0, F_PAD - IN_FEATURES - 1))).T          # (F_PAD, b_pad)

    # W1 augmented with b1 as its last real column, padded to F_PAD.
    w1_aug = jnp.concatenate(
        [w1.astype(jnp.float32), b1.astype(jnp.float32)[:, None]], axis=1)  # (H, 6)
    w1_p = jnp.pad(w1_aug, ((0, 0), (0, F_PAD - IN_FEATURES - 1)))          # (H, F_PAD)

    # W2 / b2 padded from 4 -> 8 output rows for full (8,128) stores.
    w2_p = jnp.pad(w2.astype(jnp.float32),
                   ((0, A_PAD - NUM_ACTIONS), (0, 0)))                      # (A_PAD, H)
    b2_c = jnp.pad(b2.astype(jnp.float32),
                   (0, A_PAD - NUM_ACTIONS)).reshape(A_PAD, 1)              # (A_PAD, 1)

    out_t = pl.pallas_call(
        _mlp_kernel,
        out_shape=jax.ShapeDtypeStruct((A_PAD, b_pad), jnp.float32),
        grid_spec=pl.GridSpec(
            grid=(num_tiles,),
            in_specs=[
                # x tile: marches along the batch (lane) axis.
                pl.BlockSpec((F_PAD, tb), lambda i: (0, i)),
                # Weights / bias: constant block index -> VMEM-resident.
                pl.BlockSpec((HIDDEN, F_PAD), lambda i: (0, 0)),
                pl.BlockSpec((A_PAD, HIDDEN), lambda i: (0, 0)),
                pl.BlockSpec((A_PAD, 1), lambda i: (0, 0)),
            ],
            out_specs=pl.BlockSpec((A_PAD, tb), lambda i: (0, i)),
        ),
        compiler_params=pltpu.CompilerParams(
            dimension_semantics=("parallel",),
            vmem_limit_bytes=32 * 1024 * 1024,
        ),
    )(x_t, w1_p, w2_p, b2_c)

    # Drop row / batch padding, return to the PyTorch (B, NUM_ACTIONS) layout.
    return out_t[:NUM_ACTIONS, :B].T


def init_params(key):
    k1, k2, k3, k4 = jax.random.split(key, 4)
    # PyTorch-Linear-like init (uniform in +/- 1/sqrt(fan_in)), Linear layout.
    lim1 = 1.0 / jnp.sqrt(IN_FEATURES)
    lim2 = 1.0 / jnp.sqrt(HIDDEN)
    w1 = jax.random.uniform(k1, (HIDDEN, IN_FEATURES), jnp.float32, -lim1, lim1)
    b1 = jax.random.uniform(k2, (HIDDEN,), jnp.float32, -lim1, lim1)
    w2 = jax.random.uniform(k3, (NUM_ACTIONS, HIDDEN), jnp.float32, -lim2, lim2)
    b2 = jax.random.uniform(k4, (NUM_ACTIONS,), jnp.float32, -lim2, lim2)
    return w1, b1, w2, b2


if __name__ == "__main__":
    key = jax.random.PRNGKey(0)
    kp, kx, ks = jax.random.split(key, 3)

    w1, b1, w2, b2 = init_params(kp)

    B = 8
    # local_context: (B, 4), steps_number: (B, 1) -> cat -> (B, 5) -> unsqueeze(1)
    local_context = jax.random.normal(kx, (B, 4), jnp.float32)
    steps_number = jax.random.uniform(ks, (B, 1), jnp.float32, 0.0, 10.0)
    inputs = jnp.concatenate([local_context, steps_number], axis=1)[:, None, :]  # (B,1,5)

    logits = maze_forward(inputs, w1, b1, w2, b2)
    logits = jax.block_until_ready(logits)

    # Sanity check against plain-JAX reference of the same forward.
    x2d = inputs.reshape(B, IN_FEATURES)
    ref = jnp.maximum(x2d @ w1.T + b1, 0.0) @ w2.T + b2
    assert logits.shape == (B, NUM_ACTIONS), logits.shape
    assert jnp.allclose(logits, ref, atol=1e-4, rtol=1e-4), (
        jnp.max(jnp.abs(logits - ref)))

    print("KERNEL_OK")
</pallas_src>

<mosaic_0001>
module attributes {stable_mosaic.version = 11 : i64} {
  func.func @_mlp_kernel(%arg0: i32, %arg1: memref<8x128xf32, #tpu.memory_space<vmem>>, %arg2: memref<32x8xf32, #tpu.memory_space<vmem>>, %arg3: memref<8x32xf32, #tpu.memory_space<vmem>>, %arg4: memref<8x1xf32, #tpu.memory_space<vmem>>, %arg5: memref<8x128xf32, #tpu.memory_space<vmem>>) attributes {dimension_semantics = [#tpu.dimension_semantics<parallel>], iteration_bounds = array<i64: 1>, scalar_prefetch = 0 : i64, scratch_operands = 0 : i64, tpu.core_type = #tpu.core_type<tc>, window_params = [{transform_indices = @transform_0, window_bounds = array<i64: 8, 128>}, {pipeline_mode = #tpu.pipeline_mode<synchronous>, transform_indices = @transform_1, window_bounds = array<i64: 32, 8>}, {pipeline_mode = #tpu.pipeline_mode<synchronous>, transform_indices = @transform_2, window_bounds = array<i64: 8, 32>}, {pipeline_mode = #tpu.pipeline_mode<synchronous>, transform_indices = @transform_3, window_bounds = array<i64: 8, 1>}, {transform_indices = @transform_4, window_bounds = array<i64: 8, 128>}]} {
    %c0 = arith.constant 0 : index
    %c0_0 = arith.constant 0 : index
    %0 = vector.load %arg1[%c0, %c0_0] : memref<8x128xf32, #tpu.memory_space<vmem>>, vector<8x128xf32>
    %c0_1 = arith.constant 0 : index
    %c0_2 = arith.constant 0 : index
    %1 = vector.load %arg2[%c0_1, %c0_2] : memref<32x8xf32, #tpu.memory_space<vmem>>, vector<32x8xf32>
    %cst = arith.constant dense<0.000000e+00> : vector<32x128xf32>
    %2 = tpu.matmul %1, %0, %cst {dimension_numbers = #tpu.dot_dimension_numbers<[1], [0], [0], [1], [0, 0, 1, 1], [], []>} : vector<32x8xf32>, vector<8x128xf32>, vector<32x128xf32> -> vector<32x128xf32>
    %cst_3 = arith.constant 0.000000e+00 : f32
    %3 = vector.broadcast %cst_3 : f32 to vector<32x128xf32>
    %4 = arith.maximumf %2, %3 : vector<32x128xf32>
    %c0_4 = arith.constant 0 : index
    %c0_5 = arith.constant 0 : index
    %5 = vector.load %arg3[%c0_4, %c0_5] : memref<8x32xf32, #tpu.memory_space<vmem>>, vector<8x32xf32>
    %cst_6 = arith.constant dense<0.000000e+00> : vector<8x128xf32>
    %6 = tpu.matmul %5, %4, %cst_6 {dimension_numbers = #tpu.dot_dimension_numbers<[1], [0], [0], [1], [0, 0, 1, 1], [], []>} : vector<8x32xf32>, vector<32x128xf32>, vector<8x128xf32> -> vector<8x128xf32>
    %c0_7 = arith.constant 0 : index
    %c0_8 = arith.constant 0 : index
    %7 = vector.load %arg4[%c0_7, %c0_8] : memref<8x1xf32, #tpu.memory_space<vmem>>, vector<8x1xf32>
    %8 = vector.broadcast %7 : vector<8x1xf32> to vector<8x128xf32>
    %9 = arith.addf %6, %8 : vector<8x128xf32>
    %c0_9 = arith.constant 0 : index
    %c0_10 = arith.constant 0 : index
    %10 = vector.load %arg5[%c0_9, %c0_10] : memref<8x128xf32, #tpu.memory_space<vmem>>, vector<8x128xf32>
    tpu.vector_store %arg5[%c0_9, %c0_10], %9 {strides = array<i32>} : memref<8x128xf32, #tpu.memory_space<vmem>>, vector<8x128xf32>,
    return
  }
  func.func @transform_0(%arg0: i32) -> (i32, i32) {
    %c0_i32 = arith.constant 0 : i32
    %c0_i32_0 = arith.constant 0 : i32
    return %c0_i32, %arg0 : i32, i32
  }
  func.func @transform_1(%arg0: i32) -> (i32, i32) {
    %c0_i32 = arith.constant 0 : i32
    %c0_i32_0 = arith.constant 0 : i32
    %c0_i32_1 = arith.constant 0 : i32
    return %c0_i32, %c0_i32_0 : i32, i32
  }
  func.func @transform_2(%arg0: i32) -> (i32, i32) {
    %c0_i32 = arith.constant 0 : i32
    %c0_i32_0 = arith.constant 0 : i32
    %c0_i32_1 = arith.constant 0 : i32
    return %c0_i32, %c0_i32_0 : i32, i32
  }
  func.func @transform_3(%arg0: i32) -> (i32, i32) {
    %c0_i32 = arith.constant 0 : i32
    %c0_i32_0 = arith.constant 0 : i32
    %c0_i32_1 = arith.constant 0 : i32
    return %c0_i32, %c0_i32_0 : i32, i32
  }
  func.func @transform_4(%arg0: i32) -> (i32, i32) {
    %c0_i32 = arith.constant 0 : i32
    %c0_i32_0 = arith.constant 0 : i32
    return %c0_i32, %arg0 : i32, i32
  }
}

</mosaic_0001>

<bundles_post_ra>
// kernel: maze_forward.1
= control target key start
LH: loop header
LB: loop body
LE: loop exit
PB: predicated region body
PF: predicated region fallthrough
CT: control target
= control target key end

     0   :  { %vm22_vm0 = vcmask 64512   ;;  %v113_v6 = vmov 0   ;;  %vm75_vm1 = vcmask 261120   ;;  %s163_s0 = inlined_call_operand.vmem [shape: f32[8,128], index: 0, kind: input, shape index: {}]   ;;  %s164_s1 = inlined_call_operand.vmem [shape: f32[32,8], index: 1, kind: input, shape index: {}]   ;;  %s165_s3 = inlined_call_operand.vmem [shape: f32[8,1], index: 3, kind: input, shape index: {}]   ;;  %s166_s2 = inlined_call_operand.vmem [shape: f32[8,32], index: 2, kind: input, shape index: {}]   ;;  %s167_s4 = inlined_call_operand.vmem [shape: f32[8,128], index: 4, kind: output, shape index: {}]  }
   0x1   :  { %v17_v0 = vld [vmem:[%s163_s0] sm:$0xff]  ;;  %v19_v1 = vld [vmem:[%s164_s1 + $0x8] sm:$0xff]  ;;  %v21_v2 = vld [vmem:[%s164_s1 + $0x18] sm:$0xff]  ;;  %112 = vset.pattern.permute.xlu0 %v113_v6 }
   0x2   :  { %109 = vmatpush.msra.mxu2 %v17_v0  ;;  %110 = vmatpush.msra.mxu3 %v17_v0  ;;  %v18_v3 = vld [vmem:[%s164_s1] sm:$0xff]  ;;  %v20_v4 = vld [vmem:[%s164_s1 + $0x10] sm:$0xff] }
   0x3   :  { %105 = vmatmul.msk.f32.vlgmr.msra.gmra.mxu2 %vm22_vm0, %v19_v1  ;;  %107 = vmatmul.msk.f32.vlgmr.msra.gmra.mxu3 %vm22_vm0, %v21_v2  ;;  %v69_v5 = vld [vmem:[%s165_s3] sm:$0xff] }
   0x4   :  { %50 = vmatpush.msra.mxu0 %v17_v0  ;;  %72 = vperm.xlu0 %112, %v69_v5   ;;  %v68_v15 = vld [vmem:[%s166_s2] sm:$0xff] }
   0x5   :  { %104 = vmatmul.msk.f32.vlgmr.msra.gmra.mxu0 %vm22_vm0, %v18_v3 }
   0xb   :  { %106 = vmatmul.msk.f32.gmra.mxu2 %vm22_vm0, %v20_v4 }
  0x76   :  { %v73_v16 = vpop.permute.xlu0 %72 }
  0x82   :  { %v52_v11 = vpop.f32.mrf.mxu0 }
  0x83   :  { %v64_v14 = vmax.f32 %v52_v11, 0.0 }
  0x86   :  { %v55_v7 = vpop.f32.mrf.mxu2  ;;  %v61_v8 = vpop.f32.mrf.mxu3 }
  0x87   :  { %v67_v9 = vmax.f32 %v61_v8, 0.0  ;;  %v65_v13 = vmax.f32 %v55_v7, 0.0 }
  0x89   :  { %91 = vmatpush.msra.mxu1 %v67_v9 }
  0x8e   :  { %v58_v10 = vpop.f32.mrf.mxu2 }
  0x8f   :  { %v66_v12 = vmax.f32 %v58_v10, 0.0 }
  0x91   :  { %92 = vmatpush.msra.mxu1 %v66_v12 }
  0x93   :  { %93 = vmatpush.msra.mxu1 %v65_v13 }
  0x95   :  { %94 = vmatpush.msra.mxu1 %v64_v14 }
  0x96   :  { %108 = vmatmul.msk.f32.vlgmr.msra.gmra.mxu1 %vm75_vm1, %v68_v15 }
 0x113   :  { %v96_v17 = vpop.f32.mrf.mxu1 }
 0x114   :  { %v97_v18 = vadd.f32 %v96_v17, %v73_v16 }
 0x116   :  { %99 = vst [vmem:[%s167_s4] sm:$0xff] %v97_v18 }

</bundles_post_ra>
